<compile_context>
chip_gen: v7x
topology: tpu7x:2x2x1
jax: 0.10.0
libtpu: 0.0.40
codegen_flags: <defaults>
</compile_context>

<pallas_src>
import functools

import jax
import jax.numpy as jnp
from jax import lax
from jax.experimental import pallas as pl
from jax.experimental.pallas import tpu as pltpu

KSIZE = 7
PAD = (KSIZE - 1) // 2
LANE = 128


def _st_attention_kernel(x_ref, w1t_ref, w2t_ref, wconv_ref, o_ref, *, inv_L):
    """x_ref: (Bt, C, Lp) VMEM (native dtype); w1t_ref: (C, Cr) f32 VMEM (= W1^T);
    w2t_ref: (Cr, C) f32 VMEM (= W2^T); wconv_ref: (2*KSIZE,) f32 SMEM
    [avg-channel taps | max-channel taps]; o_ref: (Bt, C, Lp) VMEM.
    inv_L = 1 / (un-padded L) so the channel mean ignores the lane padding."""
    x = x_ref[...]                                   # keep native dtype (bf16 stays bf16)
    Bt, C, Lp = x.shape
    cdt = x.dtype

    # ---------------- Channel attention: mean over L (f32 acc) + tiny MLP on the MXU ----
    y = jnp.sum(x, axis=-1, dtype=jnp.float32) * inv_L                       # (Bt, C) f32
    h = jnp.maximum(
        jnp.dot(y, w1t_ref[...], preferred_element_type=jnp.float32,
                precision=jax.lax.Precision.HIGHEST), 0.0)                   # (Bt, Cr)
    s = jax.nn.sigmoid(
        jnp.dot(h, w2t_ref[...], preferred_element_type=jnp.float32,
                precision=jax.lax.Precision.HIGHEST))                        # (Bt, C)
    s_b = s.astype(cdt)[:, :, None]                                          # (Bt, C, 1)
    x_ca = x * s_b                                                           # (Bt, C, Lp)

    # ---------------- Spatial attention: channel mean/max (f32) + 7-tap conv via rolls --
    avg_out = jnp.mean(x_ca, axis=1, dtype=jnp.float32)                      # (Bt, Lp) f32
    max_out = jnp.max(x_ca, axis=1).astype(jnp.float32)                      # (Bt, Lp) f32

    pos = lax.broadcasted_iota(jnp.int32, (1, Lp), 1)                        # lane index
    acc = jnp.zeros((Bt, Lp), jnp.float32)
    for k in range(KSIZE):                           # statically unrolled 7 taps
        d = k - PAD                                  # input offset for this tap
        wa = wconv_ref[k]                            # scalar avg-channel tap (SMEM)
        wm = wconv_ref[KSIZE + k]                    # scalar max-channel tap (SMEM)
        if d == 0:
            acc = acc + wa * avg_out + wm * max_out  # center tap: always valid
        else:
            ra = pltpu.roll(avg_out, shift=(-d) % Lp, axis=1)   # ra[l] = avg[(l + d) % Lp]
            rm = pltpu.roll(max_out, shift=(-d) % Lp, axis=1)
            valid = (pos + d >= 0) & (pos + d < Lp)  # zero-padding mask (block == full Lp)
            acc = acc + jnp.where(valid, wa * ra + wm * rm, 0.0)

    att = jax.nn.sigmoid(acc).astype(cdt)[:, None, :]                        # (Bt, 1, Lp)
    # Recompute x*s for the store so x_ca's live range ends at the channel reductions.
    o_ref[...] = ((x * s_b) * att).astype(o_ref.dtype)


def _tpu_vmem_info():
    """Return (vmem_limit_bytes, resident_budget_bytes, has_two_tensorcores)."""
    vmem_cap = None
    try:
        vmem_cap = int(pltpu.get_tpu_info().vmem_capacity_bytes)
    except Exception:
        vmem_cap = None
    kind = ""
    try:
        kind = jax.devices()[0].device_kind.lower()
    except Exception:
        pass
    two_cores = "v7" in kind
    if vmem_cap is None:
        vmem_cap = (64 << 20) if two_cores else (128 << 20)
    vmem_limit = int(max(min(vmem_cap - (16 << 20), 100 << 20), 32 << 20))
    budget = max(int(vmem_limit * 0.8), 8 << 20)
    return vmem_limit, budget, two_cores


def _choose_batch_tile(B, C, L, itemsize, budget, two_cores):
    """Largest batch tile whose resident VMEM footprint fits the budget.
    Per batch element: 4*itemsize bytes for double-buffered in+out blocks plus
    ~3*itemsize of live slab temps (loaded x, x_ca, one op temp) plus small (Bt,L) rows."""
    per_batch = 7 * itemsize * C * L + 48 * L
    bt = max(1, min(B, budget // max(per_batch, 1)))
    if two_cores and B >= 6:
        # v7x only: keep ~3 grid steps per TensorCore so the pipeline has DMA to overlap.
        bt = min(bt, -(-B // 6))
    return int(bt)


def spatio_temporal_attention(x, w1, w2, wconv, *, batch_tile=None):
    """x: (B, C, L) f32/bf16; w1: (Cr, C) [Linear(C->Cr) weight]; w2: (C, Cr) [Linear(Cr->C)];
    wconv: (1, 2, KSIZE) [Conv1d(2->1, k=7, pad=3, no bias) weight]."""
    B, C, L = x.shape
    Cr = w1.shape[0]

    # Lane-dense output: pad L up to a multiple of 128.  Padded x columns are zero, which
    # matches the conv's zero padding; the channel mean is normalized by the real L, and
    # the padded columns are sliced off after the call.
    Lp = -(-L // LANE) * LANE
    xp = x if Lp == L else jnp.pad(x, ((0, 0), (0, 0), (0, Lp - L)))

    w1t = jnp.asarray(w1, jnp.float32).T                          # (C, Cr): avoid in-kernel T
    w2t = jnp.asarray(w2, jnp.float32).T                          # (Cr, C): avoid in-kernel T
    wconv_flat = jnp.asarray(wconv, jnp.float32).reshape(2 * KSIZE)  # [avg taps | max taps]

    vmem_limit, budget, two_cores = _tpu_vmem_info()
    itemsize = jnp.dtype(x.dtype).itemsize
    Bt = batch_tile if batch_tile is not None else _choose_batch_tile(
        B, C, Lp, itemsize, budget, two_cores)
    grid = (pl.cdiv(B, Bt),)

    kernel = functools.partial(_st_attention_kernel, inv_L=1.0 / L)

    grid_spec = pltpu.PrefetchScalarGridSpec(
        num_scalar_prefetch=0,
        grid=grid,
        in_specs=[
            # NOTE: the conv boundary mask assumes each block carries the FULL padded L axis.
            pl.BlockSpec((Bt, C, Lp), lambda b: (b, 0, 0)),             # x batch block
            pl.BlockSpec((C, Cr), lambda b: (0, 0)),                    # W1^T (resident)
            pl.BlockSpec((Cr, C), lambda b: (0, 0)),                    # W2^T (resident)
            pl.BlockSpec(memory_space=pltpu.MemorySpace.SMEM),          # conv taps: SMEM scalars
        ],
        out_specs=pl.BlockSpec((Bt, C, Lp), lambda b: (b, 0, 0)),
    )
    out = pl.pallas_call(
        kernel,
        out_shape=jax.ShapeDtypeStruct((B, C, Lp), x.dtype),
        grid_spec=grid_spec,
        compiler_params=pltpu.CompilerParams(
            dimension_semantics=("parallel",),
            vmem_limit_bytes=vmem_limit,
        ),
    )(xp, w1t, w2t, wconv_flat)
    return out if Lp == L else out[:, :, :L]


def ref_forward(x, w1, w2, wconv):
    """Pure-JAX reference mirroring the PyTorch module."""
    y = x.mean(axis=2)                                      # (B, C)
    h = jax.nn.relu(y @ w1.T)                               # (B, Cr)
    s = jax.nn.sigmoid(h @ w2.T)                            # (B, C)
    x_ca = x * s[:, :, None]
    avg = x_ca.mean(axis=1, keepdims=True)                  # (B, 1, L)
    mx = x_ca.max(axis=1, keepdims=True)                    # (B, 1, L)
    cat = jnp.concatenate([avg, mx], axis=1)                # (B, 2, L)
    out = lax.conv_general_dilated(
        cat, wconv, window_strides=(1,), padding=[(PAD, PAD)],
        dimension_numbers=("NCH", "OIH", "NCH"))            # (B, 1, L)
    att = jax.nn.sigmoid(out)
    return x_ca * att


if __name__ == "__main__":
    jax.config.update("jax_default_matmul_precision", "highest")   # keep the f32 ref f32-precise

    B, C, L = 2, 32, 128
    reduction = 16
    Cr = C // reduction

    key = jax.random.PRNGKey(0)
    k1, k2, k3, k4 = jax.random.split(key, 4)
    x = jax.random.normal(k1, (B, C, L), jnp.float32)
    w1 = jax.random.normal(k2, (Cr, C), jnp.float32) * 0.1          # Linear(C -> C//r), no bias
    w2 = jax.random.normal(k3, (C, Cr), jnp.float32) * 0.1          # Linear(C//r -> C), no bias
    wconv = jax.random.normal(k4, (1, 2, KSIZE), jnp.float32) * 0.1  # Conv1d(2 -> 1, k=7), no bias

    # f32 path
    out = jax.block_until_ready(spatio_temporal_attention(x, w1, w2, wconv))
    ref = ref_forward(x, w1, w2, wconv)
    assert out.shape == (B, C, L)
    err = float(jnp.max(jnp.abs(out - ref)))
    assert jnp.allclose(out, ref, atol=1e-4, rtol=1e-4), err

    # bf16 I/O path: elementwise math stays bf16 in-kernel; reductions accumulate in f32.
    x_bf16 = x.astype(jnp.bfloat16)
    out_bf = jax.block_until_ready(spatio_temporal_attention(x_bf16, w1, w2, wconv))
    assert out_bf.dtype == jnp.bfloat16
    ref_bf = ref_forward(x_bf16.astype(jnp.float32), w1, w2, wconv)
    err_bf = float(jnp.max(jnp.abs(out_bf.astype(jnp.float32) - ref_bf)))
    assert jnp.allclose(out_bf.astype(jnp.float32), ref_bf, atol=6e-2, rtol=6e-2), err_bf

    # Non-128-multiple L exercises the lane-padding path (mean normalized by real L).
    x_odd = jax.random.normal(k1, (3, C, 96), jnp.float32)
    out_odd = jax.block_until_ready(spatio_temporal_attention(x_odd, w1, w2, wconv))
    ref_odd = ref_forward(x_odd, w1, w2, wconv)
    err_odd = float(jnp.max(jnp.abs(out_odd - ref_odd)))
    assert jnp.allclose(out_odd, ref_odd, atol=1e-4, rtol=1e-4), err_odd

    print("KERNEL_OK")
</pallas_src>

<mosaic_0001>
module attributes {stable_mosaic.version = 11 : i64} {
  func.func @_st_attention_kernel(%arg0: i32, %arg1: memref<2x32x128xf32, #tpu.memory_space<vmem>>, %arg2: memref<32x2xf32, #tpu.memory_space<vmem>>, %arg3: memref<2x32xf32, #tpu.memory_space<vmem>>, %arg4: memref<14xf32, #tpu.memory_space<smem>>, %arg5: memref<2x32x128xf32, #tpu.memory_space<vmem>>) attributes {dimension_semantics = [#tpu.dimension_semantics<parallel>], iteration_bounds = array<i64: 1>, scalar_prefetch = 0 : i64, scratch_operands = 0 : i64, tpu.core_type = #tpu.core_type<tc>, window_params = [{transform_indices = @transform_0, window_bounds = array<i64: 2, 32, 128>}, {pipeline_mode = #tpu.pipeline_mode<synchronous>, transform_indices = @transform_1, window_bounds = array<i64: 32, 2>}, {pipeline_mode = #tpu.pipeline_mode<synchronous>, transform_indices = @transform_2, window_bounds = array<i64: 2, 32>}, {transform_indices = @transform_3, window_bounds = array<i64: 14>}, {transform_indices = @transform_4, window_bounds = array<i64: 2, 32, 128>}]} {
    %c0 = arith.constant 0 : index
    %c0_0 = arith.constant 0 : index
    %c0_1 = arith.constant 0 : index
    %0 = vector.load %arg1[%c0, %c0_0, %c0_1] : memref<2x32x128xf32, #tpu.memory_space<vmem>>, vector<2x32x128xf32>
    %cst = arith.constant dense<0.000000e+00> : vector<2x32xf32>
    %1 = vector.multi_reduction <add>, %0, %cst [2] : vector<2x32x128xf32> to vector<2x32xf32>
    %cst_2 = arith.constant 7.812500e-03 : f32
    %2 = vector.broadcast %cst_2 : f32 to vector<2x32xf32>
    %3 = arith.mulf %1, %2 : vector<2x32xf32>
    %c0_3 = arith.constant 0 : index
    %c0_4 = arith.constant 0 : index
    %4 = vector.load %arg2[%c0_3, %c0_4] : memref<32x2xf32, #tpu.memory_space<vmem>>, vector<32x2xf32>
    %cst_5 = arith.constant dense<0.000000e+00> : vector<2x2xf32>
    %5 = tpu.matmul %3, %4, %cst_5 {dimension_numbers = #tpu.dot_dimension_numbers<[1], [0], [0], [1], [0, 0, 1, 1], [], []>, precision = #tpu.contract_precision<fp32>} : vector<2x32xf32>, vector<32x2xf32>, vector<2x2xf32> -> vector<2x2xf32>
    %cst_6 = arith.constant 0.000000e+00 : f32
    %6 = vector.broadcast %cst_6 : f32 to vector<2x2xf32>
    %7 = arith.maximumf %5, %6 : vector<2x2xf32>
    %c0_7 = arith.constant 0 : index
    %c0_8 = arith.constant 0 : index
    %8 = vector.load %arg3[%c0_7, %c0_8] : memref<2x32xf32, #tpu.memory_space<vmem>>, vector<2x32xf32>
    %cst_9 = arith.constant dense<0.000000e+00> : vector<2x32xf32>
    %9 = tpu.matmul %7, %8, %cst_9 {dimension_numbers = #tpu.dot_dimension_numbers<[1], [0], [0], [1], [0, 0, 1, 1], [], []>, precision = #tpu.contract_precision<fp32>} : vector<2x2xf32>, vector<2x32xf32>, vector<2x32xf32> -> vector<2x32xf32>
    %10 = arith.negf %9 : vector<2x32xf32>
    %11 = math.exp %10 : vector<2x32xf32>
    %cst_10 = arith.constant 1.000000e+00 : f32
    %12 = vector.broadcast %cst_10 : f32 to vector<2x32xf32>
    %13 = arith.addf %12, %11 : vector<2x32xf32>
    %14 = arith.divf %12, %13 : vector<2x32xf32>
    %15 = vector.shape_cast %14 : vector<2x32xf32> to vector<2x32x1xf32>
    %16 = vector.broadcast %15 : vector<2x32x1xf32> to vector<2x32x128xf32>
    %17 = arith.mulf %0, %16 : vector<2x32x128xf32>
    %cst_11 = arith.constant dense<0.000000e+00> : vector<2x128xf32>
    %18 = vector.multi_reduction <add>, %17, %cst_11 [1] : vector<2x32x128xf32> to vector<2x128xf32>
    %cst_12 = arith.constant 3.200000e+01 : f32
    %19 = vector.broadcast %cst_12 : f32 to vector<2x128xf32>
    %20 = arith.divf %18, %19 : vector<2x128xf32>
    %cst_13 = arith.constant dense<0xFF800000> : vector<2x128xf32>
    %21 = vector.multi_reduction <maximumf>, %17, %cst_13 [1] : vector<2x32x128xf32> to vector<2x128xf32>
    %22 = tpu.iota {dimensions = array<i32: 1>} : vector<1x128xi32>
    %cst_14 = arith.constant 0.000000e+00 : f32
    %23 = vector.broadcast %cst_14 : f32 to vector<2x128xf32>
    %c0_15 = arith.constant 0 : index
    %24 = memref.load %arg4[%c0_15] : memref<14xf32, #tpu.memory_space<smem>>
    %c7 = arith.constant 7 : index
    %25 = memref.load %arg4[%c7] : memref<14xf32, #tpu.memory_space<smem>>
    %c3_i32 = arith.constant 3 : i32
    %26 = tpu.dynamic_rotate %20 by %c3_i32 dim 1 : vector<2x128xf32>, i32 -> vector<2x128xf32>
    %c3_i32_16 = arith.constant 3 : i32
    %27 = tpu.dynamic_rotate %21 by %c3_i32_16 dim 1 : vector<2x128xf32>, i32 -> vector<2x128xf32>
    %c-3_i32 = arith.constant -3 : i32
    %28 = vector.broadcast %c-3_i32 : i32 to vector<1x128xi32>
    %29 = arith.addi %22, %28 : vector<1x128xi32>
    %c0_i32 = arith.constant 0 : i32
    %30 = vector.broadcast %c0_i32 : i32 to vector<1x128xi32>
    %31 = arith.cmpi sge, %29, %30 : vector<1x128xi32>
    %c-3_i32_17 = arith.constant -3 : i32
    %32 = vector.broadcast %c-3_i32_17 : i32 to vector<1x128xi32>
    %33 = arith.addi %22, %32 : vector<1x128xi32>
    %c128_i32 = arith.constant 128 : i32
    %34 = vector.broadcast %c128_i32 : i32 to vector<1x128xi32>
    %35 = arith.cmpi slt, %33, %34 : vector<1x128xi32>
    %36 = arith.andi %31, %35 : vector<1x128xi1>
    %37 = vector.broadcast %24 : f32 to vector<2x128xf32>
    %38 = arith.mulf %37, %26 : vector<2x128xf32>
    %39 = vector.broadcast %25 : f32 to vector<2x128xf32>
    %40 = arith.mulf %39, %27 : vector<2x128xf32>
    %41 = arith.addf %38, %40 : vector<2x128xf32>
    %cst_18 = arith.constant 0.000000e+00 : f32
    %42 = vector.shape_cast %36 : vector<1x128xi1> to vector<1x128xi1>
    %43 = vector.broadcast %42 : vector<1x128xi1> to vector<2x128xi1>
    %44 = vector.broadcast %cst_18 : f32 to vector<2x128xf32>
    %45 = arith.select %43, %41, %44 : vector<2x128xi1>, vector<2x128xf32>
    %46 = arith.addf %23, %45 : vector<2x128xf32>
    %c1 = arith.constant 1 : index
    %47 = memref.load %arg4[%c1] : memref<14xf32, #tpu.memory_space<smem>>
    %c8 = arith.constant 8 : index
    %48 = memref.load %arg4[%c8] : memref<14xf32, #tpu.memory_space<smem>>
    %c2_i32 = arith.constant 2 : i32
    %49 = tpu.dynamic_rotate %20 by %c2_i32 dim 1 : vector<2x128xf32>, i32 -> vector<2x128xf32>
    %c2_i32_19 = arith.constant 2 : i32
    %50 = tpu.dynamic_rotate %21 by %c2_i32_19 dim 1 : vector<2x128xf32>, i32 -> vector<2x128xf32>
    %c-2_i32 = arith.constant -2 : i32
    %51 = vector.broadcast %c-2_i32 : i32 to vector<1x128xi32>
    %52 = arith.addi %22, %51 : vector<1x128xi32>
    %c0_i32_20 = arith.constant 0 : i32
    %53 = vector.broadcast %c0_i32_20 : i32 to vector<1x128xi32>
    %54 = arith.cmpi sge, %52, %53 : vector<1x128xi32>
    %c-2_i32_21 = arith.constant -2 : i32
    %55 = vector.broadcast %c-2_i32_21 : i32 to vector<1x128xi32>
    %56 = arith.addi %22, %55 : vector<1x128xi32>
    %c128_i32_22 = arith.constant 128 : i32
    %57 = vector.broadcast %c128_i32_22 : i32 to vector<1x128xi32>
    %58 = arith.cmpi slt, %56, %57 : vector<1x128xi32>
    %59 = arith.andi %54, %58 : vector<1x128xi1>
    %60 = vector.broadcast %47 : f32 to vector<2x128xf32>
    %61 = arith.mulf %60, %49 : vector<2x128xf32>
    %62 = vector.broadcast %48 : f32 to vector<2x128xf32>
    %63 = arith.mulf %62, %50 : vector<2x128xf32>
    %64 = arith.addf %61, %63 : vector<2x128xf32>
    %cst_23 = arith.constant 0.000000e+00 : f32
    %65 = vector.shape_cast %59 : vector<1x128xi1> to vector<1x128xi1>
    %66 = vector.broadcast %65 : vector<1x128xi1> to vector<2x128xi1>
    %67 = vector.broadcast %cst_23 : f32 to vector<2x128xf32>
    %68 = arith.select %66, %64, %67 : vector<2x128xi1>, vector<2x128xf32>
    %69 = arith.addf %46, %68 : vector<2x128xf32>
    %c2 = arith.constant 2 : index
    %70 = memref.load %arg4[%c2] : memref<14xf32, #tpu.memory_space<smem>>
    %c9 = arith.constant 9 : index
    %71 = memref.load %arg4[%c9] : memref<14xf32, #tpu.memory_space<smem>>
    %c1_i32 = arith.constant 1 : i32
    %72 = tpu.dynamic_rotate %20 by %c1_i32 dim 1 : vector<2x128xf32>, i32 -> vector<2x128xf32>
    %c1_i32_24 = arith.constant 1 : i32
    %73 = tpu.dynamic_rotate %21 by %c1_i32_24 dim 1 : vector<2x128xf32>, i32 -> vector<2x128xf32>
    %c-1_i32 = arith.constant -1 : i32
    %74 = vector.broadcast %c-1_i32 : i32 to vector<1x128xi32>
    %75 = arith.addi %22, %74 : vector<1x128xi32>
    %c0_i32_25 = arith.constant 0 : i32
    %76 = vector.broadcast %c0_i32_25 : i32 to vector<1x128xi32>
    %77 = arith.cmpi sge, %75, %76 : vector<1x128xi32>
    %c-1_i32_26 = arith.constant -1 : i32
    %78 = vector.broadcast %c-1_i32_26 : i32 to vector<1x128xi32>
    %79 = arith.addi %22, %78 : vector<1x128xi32>
    %c128_i32_27 = arith.constant 128 : i32
    %80 = vector.broadcast %c128_i32_27 : i32 to vector<1x128xi32>
    %81 = arith.cmpi slt, %79, %80 : vector<1x128xi32>
    %82 = arith.andi %77, %81 : vector<1x128xi1>
    %83 = vector.broadcast %70 : f32 to vector<2x128xf32>
    %84 = arith.mulf %83, %72 : vector<2x128xf32>
    %85 = vector.broadcast %71 : f32 to vector<2x128xf32>
    %86 = arith.mulf %85, %73 : vector<2x128xf32>
    %87 = arith.addf %84, %86 : vector<2x128xf32>
    %cst_28 = arith.constant 0.000000e+00 : f32
    %88 = vector.shape_cast %82 : vector<1x128xi1> to vector<1x128xi1>
    %89 = vector.broadcast %88 : vector<1x128xi1> to vector<2x128xi1>
    %90 = vector.broadcast %cst_28 : f32 to vector<2x128xf32>
    %91 = arith.select %89, %87, %90 : vector<2x128xi1>, vector<2x128xf32>
    %92 = arith.addf %69, %91 : vector<2x128xf32>
    %c3 = arith.constant 3 : index
    %93 = memref.load %arg4[%c3] : memref<14xf32, #tpu.memory_space<smem>>
    %c10 = arith.constant 10 : index
    %94 = memref.load %arg4[%c10] : memref<14xf32, #tpu.memory_space<smem>>
    %95 = vector.broadcast %93 : f32 to vector<2x128xf32>
    %96 = arith.mulf %95, %20 : vector<2x128xf32>
    %97 = arith.addf %92, %96 : vector<2x128xf32>
    %98 = vector.broadcast %94 : f32 to vector<2x128xf32>
    %99 = arith.mulf %98, %21 : vector<2x128xf32>
    %100 = arith.addf %97, %99 : vector<2x128xf32>
    %c4 = arith.constant 4 : index
    %101 = memref.load %arg4[%c4] : memref<14xf32, #tpu.memory_space<smem>>
    %c11 = arith.constant 11 : index
    %102 = memref.load %arg4[%c11] : memref<14xf32, #tpu.memory_space<smem>>
    %c127_i32 = arith.constant 127 : i32
    %103 = tpu.dynamic_rotate %20 by %c127_i32 dim 1 : vector<2x128xf32>, i32 -> vector<2x128xf32>
    %c127_i32_29 = arith.constant 127 : i32
    %104 = tpu.dynamic_rotate %21 by %c127_i32_29 dim 1 : vector<2x128xf32>, i32 -> vector<2x128xf32>
    %c1_i32_30 = arith.constant 1 : i32
    %105 = vector.broadcast %c1_i32_30 : i32 to vector<1x128xi32>
    %106 = arith.addi %22, %105 : vector<1x128xi32>
    %c0_i32_31 = arith.constant 0 : i32
    %107 = vector.broadcast %c0_i32_31 : i32 to vector<1x128xi32>
    %108 = arith.cmpi sge, %106, %107 : vector<1x128xi32>
    %c1_i32_32 = arith.constant 1 : i32
    %109 = vector.broadcast %c1_i32_32 : i32 to vector<1x128xi32>
    %110 = arith.addi %22, %109 : vector<1x128xi32>
    %c128_i32_33 = arith.constant 128 : i32
    %111 = vector.broadcast %c128_i32_33 : i32 to vector<1x128xi32>
    %112 = arith.cmpi slt, %110, %111 : vector<1x128xi32>
    %113 = arith.andi %108, %112 : vector<1x128xi1>
    %114 = vector.broadcast %101 : f32 to vector<2x128xf32>
    %115 = arith.mulf %114, %103 : vector<2x128xf32>
    %116 = vector.broadcast %102 : f32 to vector<2x128xf32>
    %117 = arith.mulf %116, %104 : vector<2x128xf32>
    %118 = arith.addf %115, %117 : vector<2x128xf32>
    %cst_34 = arith.constant 0.000000e+00 : f32
    %119 = vector.shape_cast %113 : vector<1x128xi1> to vector<1x128xi1>
    %120 = vector.broadcast %119 : vector<1x128xi1> to vector<2x128xi1>
    %121 = vector.broadcast %cst_34 : f32 to vector<2x128xf32>
    %122 = arith.select %120, %118, %121 : vector<2x128xi1>, vector<2x128xf32>
    %123 = arith.addf %100, %122 : vector<2x128xf32>
    %c5 = arith.constant 5 : index
    %124 = memref.load %arg4[%c5] : memref<14xf32, #tpu.memory_space<smem>>
    %c12 = arith.constant 12 : index
    %125 = memref.load %arg4[%c12] : memref<14xf32, #tpu.memory_space<smem>>
    %c126_i32 = arith.constant 126 : i32
    %126 = tpu.dynamic_rotate %20 by %c126_i32 dim 1 : vector<2x128xf32>, i32 -> vector<2x128xf32>
    %c126_i32_35 = arith.constant 126 : i32
    %127 = tpu.dynamic_rotate %21 by %c126_i32_35 dim 1 : vector<2x128xf32>, i32 -> vector<2x128xf32>
    %c2_i32_36 = arith.constant 2 : i32
    %128 = vector.broadcast %c2_i32_36 : i32 to vector<1x128xi32>
    %129 = arith.addi %22, %128 : vector<1x128xi32>
    %c0_i32_37 = arith.constant 0 : i32
    %130 = vector.broadcast %c0_i32_37 : i32 to vector<1x128xi32>
    %131 = arith.cmpi sge, %129, %130 : vector<1x128xi32>
    %c2_i32_38 = arith.constant 2 : i32
    %132 = vector.broadcast %c2_i32_38 : i32 to vector<1x128xi32>
    %133 = arith.addi %22, %132 : vector<1x128xi32>
    %c128_i32_39 = arith.constant 128 : i32
    %134 = vector.broadcast %c128_i32_39 : i32 to vector<1x128xi32>
    %135 = arith.cmpi slt, %133, %134 : vector<1x128xi32>
    %136 = arith.andi %131, %135 : vector<1x128xi1>
    %137 = vector.broadcast %124 : f32 to vector<2x128xf32>
    %138 = arith.mulf %137, %126 : vector<2x128xf32>
    %139 = vector.broadcast %125 : f32 to vector<2x128xf32>
    %140 = arith.mulf %139, %127 : vector<2x128xf32>
    %141 = arith.addf %138, %140 : vector<2x128xf32>
    %cst_40 = arith.constant 0.000000e+00 : f32
    %142 = vector.shape_cast %136 : vector<1x128xi1> to vector<1x128xi1>
    %143 = vector.broadcast %142 : vector<1x128xi1> to vector<2x128xi1>
    %144 = vector.broadcast %cst_40 : f32 to vector<2x128xf32>
    %145 = arith.select %143, %141, %144 : vector<2x128xi1>, vector<2x128xf32>
    %146 = arith.addf %123, %145 : vector<2x128xf32>
    %c6 = arith.constant 6 : index
    %147 = memref.load %arg4[%c6] : memref<14xf32, #tpu.memory_space<smem>>
    %c13 = arith.constant 13 : index
    %148 = memref.load %arg4[%c13] : memref<14xf32, #tpu.memory_space<smem>>
    %c125_i32 = arith.constant 125 : i32
    %149 = tpu.dynamic_rotate %20 by %c125_i32 dim 1 : vector<2x128xf32>, i32 -> vector<2x128xf32>
    %c125_i32_41 = arith.constant 125 : i32
    %150 = tpu.dynamic_rotate %21 by %c125_i32_41 dim 1 : vector<2x128xf32>, i32 -> vector<2x128xf32>
    %c3_i32_42 = arith.constant 3 : i32
    %151 = vector.broadcast %c3_i32_42 : i32 to vector<1x128xi32>
    %152 = arith.addi %22, %151 : vector<1x128xi32>
    %c0_i32_43 = arith.constant 0 : i32
    %153 = vector.broadcast %c0_i32_43 : i32 to vector<1x128xi32>
    %154 = arith.cmpi sge, %152, %153 : vector<1x128xi32>
    %c3_i32_44 = arith.constant 3 : i32
    %155 = vector.broadcast %c3_i32_44 : i32 to vector<1x128xi32>
    %156 = arith.addi %22, %155 : vector<1x128xi32>
    %c128_i32_45 = arith.constant 128 : i32
    %157 = vector.broadcast %c128_i32_45 : i32 to vector<1x128xi32>
    %158 = arith.cmpi slt, %156, %157 : vector<1x128xi32>
    %159 = arith.andi %154, %158 : vector<1x128xi1>
    %160 = vector.broadcast %147 : f32 to vector<2x128xf32>
    %161 = arith.mulf %160, %149 : vector<2x128xf32>
    %162 = vector.broadcast %148 : f32 to vector<2x128xf32>
    %163 = arith.mulf %162, %150 : vector<2x128xf32>
    %164 = arith.addf %161, %163 : vector<2x128xf32>
    %cst_46 = arith.constant 0.000000e+00 : f32
    %165 = vector.shape_cast %159 : vector<1x128xi1> to vector<1x128xi1>
    %166 = vector.broadcast %165 : vector<1x128xi1> to vector<2x128xi1>
    %167 = vector.broadcast %cst_46 : f32 to vector<2x128xf32>
    %168 = arith.select %166, %164, %167 : vector<2x128xi1>, vector<2x128xf32>
    %169 = arith.addf %146, %168 : vector<2x128xf32>
    %170 = arith.negf %169 : vector<2x128xf32>
    %171 = math.exp %170 : vector<2x128xf32>
    %cst_47 = arith.constant 1.000000e+00 : f32
    %172 = vector.broadcast %cst_47 : f32 to vector<2x128xf32>
    %173 = arith.addf %172, %171 : vector<2x128xf32>
    %174 = arith.divf %172, %173 : vector<2x128xf32>
    %175 = vector.shape_cast %174 : vector<2x128xf32> to vector<2x1x128xf32>
    %176 = vector.broadcast %15 : vector<2x32x1xf32> to vector<2x32x128xf32>
    %177 = arith.mulf %0, %176 : vector<2x32x128xf32>
    %178 = vector.broadcast %175 : vector<2x1x128xf32> to vector<2x32x128xf32>
    %179 = arith.mulf %177, %178 : vector<2x32x128xf32>
    %c0_48 = arith.constant 0 : index
    %c0_49 = arith.constant 0 : index
    %c0_50 = arith.constant 0 : index
    %180 = vector.load %arg5[%c0_48, %c0_49, %c0_50] : memref<2x32x128xf32, #tpu.memory_space<vmem>>, vector<2x32x128xf32>
    tpu.vector_store %arg5[%c0_48, %c0_49, %c0_50], %179 {strides = array<i32>} : memref<2x32x128xf32, #tpu.memory_space<vmem>>, vector<2x32x128xf32>,
    return
  }
  func.func @transform_0(%arg0: i32) -> (i32, i32, i32) {
    %c0_i32 = arith.constant 0 : i32
    %c0_i32_0 = arith.constant 0 : i32
    %c0_i32_1 = arith.constant 0 : i32
    return %arg0, %c0_i32, %c0_i32_0 : i32, i32, i32
  }
  func.func @transform_1(%arg0: i32) -> (i32, i32) {
    %c0_i32 = arith.constant 0 : i32
    %c0_i32_0 = arith.constant 0 : i32
    %c0_i32_1 = arith.constant 0 : i32
    return %c0_i32, %c0_i32_0 : i32, i32
  }
  func.func @transform_2(%arg0: i32) -> (i32, i32) {
    %c0_i32 = arith.constant 0 : i32
    %c0_i32_0 = arith.constant 0 : i32
    %c0_i32_1 = arith.constant 0 : i32
    return %c0_i32, %c0_i32_0 : i32, i32
  }
  func.func @transform_3(%arg0: i32) -> i32 {
    %c0_i32 = arith.constant 0 : i32
    %c0_i32_0 = arith.constant 0 : i32
    return %c0_i32 : i32
  }
  func.func @transform_4(%arg0: i32) -> (i32, i32, i32) {
    %c0_i32 = arith.constant 0 : i32
    %c0_i32_0 = arith.constant 0 : i32
    %c0_i32_1 = arith.constant 0 : i32
    return %arg0, %c0_i32, %c0_i32_0 : i32, i32, i32
  }
}

</mosaic_0001>

<bundles_post_ra>
// kernel: tpu_custom_call.1
= control target key start
LH: loop header
LB: loop body
LE: loop exit
PB: predicated region body
PF: predicated region fallthrough
CT: control target
= control target key end

     0   :  { %9 = vsyncpa [#allocation3], 0  ;;  %s2073_s0 = inlined_call_operand.hbm [shape: f32[2,32,128], index: 0, kind: input, shape index: {}]   ;;  %s2074_s1 = inlined_call_operand.hbm [shape: f32[32,2], index: 1, kind: input, shape index: {}]   ;;  %s2075_s2 = inlined_call_operand.hbm [shape: f32[2,32], index: 2, kind: input, shape index: {}]   ;;  %s2076_s3 = inlined_call_operand.hbm [shape: f32[14], index: 3, kind: input, shape index: {}]   ;;  %s2077_s4 = inlined_call_operand.hbm [shape: f32[2,32,128], index: 4, kind: output, shape index: {}]  }
   0x1   :  { %10 = vsyncpa [#allocation7], 0 }
   0x2   :  { %11 = vsyncpa [#allocation5], 0 }
   0x3   :  { %12 = vsyncpa [#allocation4], 0  ;;  %s1748_s15 = smov [#allocation6]   ;;  %s1749_s17 = smov [#allocation2]  }
   0x4   :  { %s30_s16 = sshll.u32 %s1748_s15, 4  ;;  %s18_s18 = sshll.u32 %s1749_s17, 4  ;;  %s31_s16 = int_to_ptr.vmem [resolvable:$true] %s30_s16  ;;  %s1790_s18 = int_to_ptr.vmem [resolvable:$true] %s18_s18 }
   0x5   :  { %s1642_s21 = scalar_lea.hbm %s2074_s1, 512 }
   0x6   :  { %p1643_p0 = scmp.ne.s32.totalorder %s2074_s1, %s1642_s21  ;;  %p1646_p1 = scmp.lt.u32.totalorder %s1642_s21, %s2074_s1 }
   0x8   :  { %p1648_p2 = pnand %p1646_p1, %p1643_p0 }
   0xa   :  { %1651 = shalt.err (!%p1648_p2)
}
   0xb   :  { %s1652_s26 = scalar_lea.vmem %s31_s16, 512  ;;  %p1657_p4 = scmp.lt.s32.totalorder %s31_s16, %s31_s16 }
   0xc   :  { %p1653_p3 = scmp.ne.s32.totalorder %s31_s16, %s1652_s26  ;;  %p1658_p5 = scmp.lt.s32.totalorder %s1652_s26, %s1652_s26 }
   0xe   :  { %p1659_p6 = por %p1658_p5, %p1657_p4 }
  0x10   :  { %p1660_p7 = pnand %p1659_p6, %p1653_p3 }
  0x12   :  { %1663 = shalt.err (!%p1660_p7)
}
  0x13   :  { %s1750_s27 = smov 128   ;;  %s1751_s28 = smov 8  }
  0x14   :  { %36 = dma.hbm_to_vmem [thread:$0]  %s2074_s1, 512, %s31_s16, [#allocation7], %s1750_s27, %s1750_s27, %s1751_s28  }
  0x15   :  { %s1664_s7 = scalar_lea.hbm %s2073_s0, 1024 }
  0x16   :  { %p1665_p8 = scmp.ne.s32.totalorder %s2073_s0, %s1664_s7  ;;  %p1668_p9 = scmp.lt.u32.totalorder %s1664_s7, %s2073_s0 }
  0x18   :  { %p1670_p10 = pnand %p1668_p9, %p1665_p8 }
  0x1a   :  { %1673 = shalt.err (!%p1670_p10)
}
  0x1b   :  { %s1674_s12 = scalar_lea.vmem %s1790_s18, 1024  ;;  %p1679_p12 = scmp.lt.s32.totalorder %s1790_s18, %s1790_s18 }
  0x1c   :  { %p1675_p11 = scmp.ne.s32.totalorder %s1790_s18, %s1674_s12  ;;  %p1680_p13 = scmp.lt.s32.totalorder %s1674_s12, %s1674_s12 }
  0x1e   :  { %p1681_p0 = por %p1680_p13, %p1679_p12 }
  0x20   :  { %p1682_p1 = pnand %p1681_p0, %p1675_p11 }
  0x22   :  { %1685 = shalt.err (!%p1682_p1)
}
  0x23   :  { %24 = dma.hbm_to_vmem [thread:$0]  %s2073_s0, 1024, %s1790_s18, [#allocation3], %s1750_s27, %s1750_s27, %s1751_s28  }
  0x24   :  { %s1752_s14 = smov [#allocation8]   ;;  %s1686_s19 = scalar_lea.hbm %s2075_s2, 32 }
  0x25   :  { %s43_s15 = sshll.u32 %s1752_s14, 4  ;;  %p1687_p2 = scmp.ne.s32.totalorder %s2075_s2, %s1686_s19  ;;  %s44_s15 = int_to_ptr.vmem [resolvable:$true] %s43_s15 }
  0x26   :  { %p1690_p3 = scmp.lt.u32.totalorder %s1686_s19, %s2075_s2 }
  0x28   :  { %p1692_p4 = pnand %p1690_p3, %p1687_p2 }
  0x2a   :  { %1695 = shalt.err (!%p1692_p4)
}
  0x2b   :  { %s1696_s24 = scalar_lea.vmem %s44_s15, 32  ;;  %p1701_p6 = scmp.lt.s32.totalorder %s44_s15, %s44_s15 }
  0x2c   :  { %p1697_p5 = scmp.ne.s32.totalorder %s44_s15, %s1696_s24  ;;  %p1702_p7 = scmp.lt.s32.totalorder %s1696_s24, %s1696_s24 }
  0x2e   :  { %p1703_p8 = por %p1702_p7, %p1701_p6 }
  0x30   :  { %p1704_p9 = pnand %p1703_p8, %p1697_p5 }
  0x32   :  { %1707 = shalt.err (!%p1704_p9)
}
  0x33   :  { %46 = dma.hbm_to_vmem [thread:$0]  %s2075_s2, 32, %s44_s15, [#allocation7]  }
  0x34   :  { %s1708_s29 = scalar_lea.hbm %s2076_s3, 16 }
  0x35   :  { %p1709_p10 = scmp.ne.s32.totalorder %s2076_s3, %s1708_s29  ;;  %p1712_p11 = scmp.lt.u32.totalorder %s1708_s29, %s2076_s3 }
  0x37   :  { %p1714_p12 = pnand %p1712_p11, %p1709_p10 }
  0x39   :  { %1717 = shalt.err (!%p1714_p12)
}
  0x3a   :  { %s1753_s8 = smov [#allocation9]  }
  0x3b   :  { %54 = dma.hbm_to_smem %s2076_s3, 16, %s1753_s8, [#allocation5]  }
  0x3c   :  { %1740 = dma.done.wait [#allocation3], 1024  }
  0x3d   :  { %1741 = vsyncadd [#allocation3], 4294966272 }
  0x3e   :  { %1742 = dma.done.wait [#allocation7], 544  }
  0x3f   :  { %1743 = vsyncadd [#allocation7], 4294966752 }
  0x40   :  { %1744 = dma.done.wait [#allocation5], 16  }
  0x41   :  { %1745 = vsyncadd [#allocation5], 4294967280 }
  0x42   :  { %67 = sfence }
  0x43   :  { %v1851_v0 = vld [vmem:[#allocation2 + $0x20] sm:$0xff]  ;;  %v1857_v2 = vld [vmem:[#allocation2 + $0x28] sm:$0xff]  ;;  %v1863_v4 = vld [vmem:[#allocation2 + $0x30] sm:$0xff]  ;;  %v1754_v29 = vmov 0.0|0.0   ;;  %vm1755_vm0 = vmmov 0   ;;  %v1756_v35 = vmov 0.0   ;;  %v112_v42 = vlaneseq }
  0x44   :  { %v1853_v1 = vld [vmem:[#allocation2] sm:$0xff]  ;;  %84 = vadd.xlane.f32.xlu1 %v1851_v0  ;;  %v1859_v3 = vld [vmem:[#allocation2 + $0x8] sm:$0xff]  ;;  %v1865_v5 = vld [vmem:[#allocation2 + $0x10] sm:$0xff]  ;;  %1568 = vmatprep.subr.bf16.mxu0 %v1754_v29  ;;  %vm123_vm1 = vcmask 130112   ;;  %vm130_vm2 = vcmask 195712   ;;  %vm137_vm3 = vcmask 261312  }
  0x45   :  { %76 = vadd.xlane.f32.xlu0 %v1853_v1  ;;  %v1869_v6 = vld [vmem:[#allocation2 + $0x38] sm:$0xff]  ;;  %v100_v8 = vld [vmem:[#allocation6] sm:$0xff]  ;;  %v101_v9 = vld [vmem:[#allocation6 + $0x8] sm:$0xff]  ;;  %1562 = vmatprep.subr.bf16.mxu1 %v1754_v29  ;;  %v1915_v45 = vand.u32 127, %v112_v42  ;;  %v1918_v47 = vshrl.u32 %v112_v42, 7  ;;  %vm158_vm4 = vcmask 1041409  }
  0x46   :  { %v1871_v7 = vld [vmem:[#allocation2 + $0x18] sm:$0xff]  ;;  %v164_v10 = vand.u32 4294901760, %v100_v8  ;;  %v167_v11 = vand.u32 4294901760, %v101_v9  ;;  %v102_v14 = vld [vmem:[#allocation6 + $0x10] sm:$0xff]  ;;  %1485 = vmatprep.mubr.msk.f32.mxu0 %vm1755_vm0, %v1756_v35  ;;  %1474 = vmatprep.mubr.msk.f32.mxu1 %vm1755_vm0, %v1756_v35  ;;  %vm160_vm5 = vcmask 261120   ;;  %vm654_vm6 = vcmask 1041408  }
  0x47   :  { %v103_v15 = vld [vmem:[#allocation6 + $0x18] sm:$0xff]  ;;  %v170_v18 = vand.u32 4294901760, %v102_v14  ;;  %v118_v46 = vadd.s32 4294967288, %v1915_v45  ;;  %v125_v50 = vadd.s32 4294967280, %v1915_v45  ;;  %v132_v54 = vadd.s32 4294967272, %v1915_v45  ;;  %s1415_s2 = sld [smem:[#allocation9 + $0x3]] }
  0x48   :  { %86 = vadd.xlane.f32.xlu1 %v1857_v2  ;;  %v1875_v12 = vsub.f32 %v100_v8, %v164_v10  ;;  %v1877_v13 = vsub.f32 %v101_v9, %v167_v11  ;;  %v173_v19 = vand.u32 4294901760, %v103_v15  ;;  %v1901_v37 = vpack.c.bf16 %v167_v11, %v164_v10  ;;  %s1416_s3 = sld [smem:[#allocation9 + $0xa]]  ;;  %s1757_s11 = smov 3  }
  0x49   :  { %78 = vadd.xlane.f32.xlu0 %v1859_v3  ;;  %v1883_v22 = vsub.f32 %v102_v14, %v170_v18  ;;  %v121_v51 = vsub.s32 %v118_v46, %v1918_v47  ;;  %v116_v55 = vsub.s32 %v1915_v45, %v1918_v47  ;;  %v128_v56 = vsub.s32 %v125_v50, %v1918_v47  ;;  %s1758_s12 = smov 2   ;;  %s1759_s1 = smov 1  }
  0x4a   :  { %v245_v16 = vand.u32 4294901760, %v1875_v12  ;;  %v252_v17 = vand.u32 4294901760, %v1877_v13  ;;  %v1885_v23 = vsub.f32 %v103_v15, %v173_v19  ;;  %v1575_v36 = vpack.c.bf16 %v1877_v13, %v1875_v12  ;;  %1564 = vmatpush3.bf16.msra.mxu1 %v1901_v37  ;;  %s1760_s13 = smov 127   ;;  %s1761_s14 = smov 126  }
  0x4b   :  { %v259_v26 = vand.u32 4294901760, %v1883_v22  ;;  %1565 = vmatprep.subr.bf16.mxu1 %v1754_v29  ;;  %v1907_v39 = vpack.c.bf16 %v173_v19, %v170_v18  ;;  %v135_v9 = vsub.s32 %v132_v54, %v1918_v47  ;;  %vm650_vm7 = vcmask 15360   ;;  %s1762_s15 = smov 125   ;;  %s1410_s16 = sld [smem:[#allocation9 + $0x7]] }
  0x4c   :  { %88 = vadd.xlane.f32.xlu1 %v1863_v4  ;;  %v246_v20 = vsub.f32 %v1875_v12, %v245_v16  ;;  %v253_v21 = vsub.f32 %v1877_v13, %v252_v17  ;;  %v266_v27 = vand.u32 4294901760, %v1885_v23  ;;  %v1578_v38 = vpack.c.bf16 %v1885_v23, %v1883_v22  ;;  %s1195_s17 = sld [smem:[#allocation9]]  ;;  %s1411_s20 = sld [smem:[#allocation9 + $0x1]] }
  0x4d   :  { %80 = vadd.xlane.f32.xlu0 %v1865_v5  ;;  %v260_v30 = vsub.f32 %v1883_v22, %v259_v26  ;;  %v1911_v40 = vpack.c.bf16 %v252_v17, %v245_v16  ;;  %s1412_s19 = sld [smem:[#allocation9 + $0x8]]  ;;  %s1414_s21 = sld [smem:[#allocation9 + $0x9]] }
  0x4e   :  { %v247_v24 = vand.u32 4294901760, %v246_v20  ;;  %v254_v25 = vand.u32 4294901760, %v253_v21  ;;  %v267_v31 = vsub.f32 %v1885_v23, %v266_v27  ;;  %1567 = vmatpush3.bf16.msra.mxu1 %v1907_v39  ;;  %v1913_v41 = vpack.c.bf16 %v266_v27, %v259_v26  ;;  %s1413_s22 = sld [smem:[#allocation9 + $0x2]]  ;;  %s2022_s23 = sld [smem:[#allocation9 + $0xb]] }
  0x4f   :  { %v261_v32 = vand.u32 4294901760, %v260_v30  ;;  %1532 = vmatprep.subr.mxu1 %v1756_v35  ;;  %s2024_s24 = sld [smem:[#allocation9 + $0x4]]  ;;  %s2030_s18 = sld [smem:[#allocation9 + $0x5]] }
  0x50   :  { %90 = vadd.xlane.f32.xlu1 %v1869_v6  ;;  %v1569_v28 = vpack.c.bf16 %v254_v25, %v247_v24  ;;  %v268_v33 = vand.u32 4294901760, %v267_v31  ;;  %s2028_s0 = sld [smem:[#allocation9 + $0xc]]  ;;  %s2034_s25 = sld [smem:[#allocation9 + $0xd]] }
  0x51   :  { %82 = vadd.xlane.f32.xlu0 %v1871_v7  ;;  %s2036_s26 = sld [smem:[#allocation9 + $0x6]]  ;;  %s1764_s29 = smov [#allocation10]  }
  0x52   :  { %1570 = vmatpush3.bf16.msra.mxu0 %v1569_v28  ;;  %v1572_v34 = vpack.c.bf16 %v268_v33, %v261_v32  ;;  %s1395_s30 = sshll.u32 %s1764_s29, 4  ;;  %s1396_s30 = int_to_ptr.vmem [resolvable:$true] %s1395_s30 }
  0x53   :  { %1571 = vmatprep.subr.bf16.mxu0 %v1754_v29  ;;  %s1718_s5 = scalar_lea.vmem %s1396_s30, 1024  ;;  %p1723_p0 = scmp.lt.s32.totalorder %s1396_s30, %s1396_s30 }
  0x54   :  { %p1719_p13 = scmp.ne.s32.totalorder %s1396_s30, %s1718_s5  ;;  %p1724_p1 = scmp.lt.s32.totalorder %s1718_s5, %s1718_s5 }
  0x56   :  { %1573 = vmatpush3.bf16.msra.mxu0 %v1572_v34  ;;  %v649_v34 = vld [vmem:[#allocation8] sm:$0x3]  ;;  %p1725_p2 = por %p1724_p1, %p1723_p0 }
  0x57   :  { %1574 = vmatprep.subr.bf16.mxu0 %v1754_v29 }
  0x58   :  { %p1726_p3 = pnand %p1725_p2, %p1719_p13 }
  0xd1   :  { %v85_v43 = vpop.xlane.xlu1 %84 }
  0xd2   :  { %v77_v44 = vpop.xlane.xlu0 %76  ;;  %v96_v59 = vmul.f32 0.0078125, %v85_v43 }
  0xd3   :  { %v92_v60 = vmul.f32 0.0078125, %v77_v44 }
  0xd4   :  { %v142_v14 = vrot.slane %v96_v59, %v116_v55 }
  0xd5   :  { %v87_v48 = vpop.xlane.xlu1 %86  ;;  %v117_v15 = vrot.slane %v92_v60, %v116_v55  ;;  %v1969_v60 = vsub.s32 0, %v1918_v47 }
  0xd6   :  { %v79_v49 = vpop.xlane.xlu0 %78  ;;  %v97_v52 = vmul.f32 0.0078125, %v87_v48 }
  0xd7   :  { %v93_v53 = vmul.f32 0.0078125, %v79_v49 }
  0xd8   :  { %v146_v63 = vrot.slane %v97_v52, %v121_v51 }
  0xd9   :  { %v89_v57 = vpop.xlane.xlu1 %88  ;;  %v122_v8 = vrot.slane %v93_v53, %v121_v51 }
  0xda   :  { %v81_v58 = vpop.xlane.xlu0 %80  ;;  %v98_v61 = vmul.f32 0.0078125, %v89_v57  ;;  %v147_v18 = vsel %vm123_vm1, %v146_v63, %v142_v14  ;;  %v1131_v63 = vsub.s32 1, %v1918_v47 }
  0xdb   :  { %v94_v62 = vmul.f32 0.0078125, %v81_v58  ;;  %v124_v19 = vsel %vm123_vm1, %v122_v8, %v117_v15 }
  0xdc   :  { %v151_v10 = vrot.slane %v98_v61, %v128_v56 }
  0xdd   :  { %v129_v11 = vrot.slane %v94_v62, %v128_v56  ;;  %v91_v12 = vpop.xlane.xlu1 %90 }
  0xde   :  { %v83_v13 = vpop.xlane.xlu0 %82  ;;  %v99_v16 = vmul.f32 0.0078125, %v91_v12  ;;  %v152_v22 = vsel %vm130_vm2, %v151_v10, %v147_v18 }
  0xdf   :  { %v95_v17 = vmul.f32 0.0078125, %v83_v13  ;;  %v131_v23 = vsel %vm130_vm2, %v129_v11, %v124_v19 }
  0xe0   :  { %v156_v20 = vrot.slane %v99_v16, %v135_v9 }
  0xe1   :  { %v136_v21 = vrot.slane %v95_v17, %v135_v9 }
  0xe2   :  { %v157_v24 = vsel %vm137_vm3, %v156_v20, %v152_v22 }
  0xe3   :  { %v138_v25 = vsel %vm137_vm3, %v136_v21, %v131_v23 }
  0xe4   :  { %v159_v26 = vsel %vm158_vm4, %v157_v24, %v138_v25 }
  0xe5   :  { %v161_v27 = vsel %vm160_vm5, %v159_v26, 0 }
  0xe6   :  { %v232_v28 = vand.u32 4294901760, %v161_v27 }
  0xe8   :  { %1486 = vmatmul.mubr.f32.vlgmr.msra.gmra.mrb[0].mxu0 %v232_v28  ;;  %v233_v30 = vsub.f32 %v161_v27, %v232_v28 }
  0xe9   :  { %1576 = vmatpush3.bf16.msra.mxu0 %v1575_v36  ;;  %1496 = vmatprep.mubr.msk.f32.mxu0 %vm1755_vm0, %v1756_v35  ;;  %v656_v36 = vsel %vm654_vm6, %v649_v34, 0 }
  0xea   :  { %1577 = vmatprep.subr.bf16.mxu0 %v1754_v29  ;;  %v234_v31 = vand.u32 4294901760, %v233_v30 }
  0xec   :  { %v235_v32 = vsub.f32 %v233_v30, %v234_v31 }
  0xed   :  { %1579 = vmatpush3.bf16.msra.mxu0 %v1578_v38  ;;  %v659_v38 = vand.u32 4294901760, %v656_v36 }
  0xee   :  { %1580 = vmatprep.subr.bf16.mxu0 %v1754_v29  ;;  %v236_v33 = vand.u32 4294901760, %v235_v32 }
  0xef   :  { %v736_v44 = vsub.f32 %v656_v36, %v659_v38 }
  0xf0   :  { %1475 = vmatmul.mubr.f32.vlgmr.msra.gmra.mrb[0].mxu1 %v236_v33  ;;  %1497 = vmatmul.mubr.f32.vlgmr.msra.gmra.mrb[0].mxu0 %v233_v30 }
  0xf1   :  { %1582 = vmatpush3.bf16.msra.mxu0 %v1901_v37  ;;  %1507 = vmatprep.mubr.msk.f32.mxu0 %vm1755_vm0, %v1756_v35 }
  0xf2   :  { %1583 = vmatprep.subr.bf16.mxu0 %v1754_v29  ;;  %1534 = vmatprep.mubr.msk.f32.mxu1 %vm1755_vm0, %v1756_v35 }
  0xf3   :  { %1533 = vmatpush3.msra.mxu1 %v659_v38 }
  0xf4   :  { %1537 = vmatprep.subr.mxu1 %v1756_v35 }
  0xf5   :  { %1585 = vmatpush3.bf16.msra.mxu0 %v1907_v39 }
  0xf6   :  { %1586 = vmatprep.subr.bf16.mxu0 %v1754_v29 }
  0xf8   :  { %1508 = vmatmul.mubr.f32.vlgmr.msra.gmra.mrb[0].mxu0 %v234_v31 }
  0xf9   :  { %1588 = vmatpush3.bf16.msra.mxu0 %v1911_v40  ;;  %1518 = vmatprep.mubr.msk.f32.mxu0 %vm1755_vm0, %v1756_v35 }
  0xfa   :  { %1589 = vmatprep.subr.bf16.mxu0 %v1754_v29 }
  0xfd   :  { %1591 = vmatpush3.bf16.msra.mxu0 %v1913_v41 }
  0xfe   :  { %1592 = vmatprep.subr.bf16.mxu0 %v1754_v29 }
 0x100   :  { %1519 = vmatmul.mubr.f32.vlgmr.msra.gmra.mrb[0].mxu0 %v232_v28 }
 0x101   :  { %1594 = vmatpush3.bf16.msra.mxu0 %v1901_v37  ;;  %1529 = vmatprep.mubr.msk.f32.mxu0 %vm1755_vm0, %v1756_v35 }
 0x102   :  { %1595 = vmatprep.subr.bf16.mxu0 %v1754_v29  ;;  %v737_v29 = vand.u32 4294901760, %v736_v44 }
 0x104   :  { %v738_v50 = vsub.f32 %v736_v44, %v737_v29 }
 0x105   :  { %1597 = vmatpush3.bf16.msra.mxu0 %v1907_v39 }
 0x106   :  { %v739_v53 = vand.u32 4294901760, %v738_v50 }
 0x108   :  { %1530 = vmatmul.mubr.f32.vlgmr.msra.gmra.mrb[0].mxu0 %v232_v28 }
 0x1c3   :  { %v238_v40 = vpop.f32.mrb[0].mxu1 }
 0x1c4   :  { %v1476_v41 = vpop.f32.mrb[1].mxu1 }
 0x1db   :  { %v644_v42 = vpop.f32.mrb[0].mxu0 }
 0x1dc   :  { %v1598_v43 = vadd.f32 %v644_v42, %v238_v40  ;;  %v1531_v37 = vpop.f32.mrb[1].mxu0 }
 0x1de   :  { %v648_v46 = vmax.f32 %v1598_v43, 0.0 }
 0x1e0   :  { %v652_v48 = vsel %vm650_vm7, %v648_v46, 0 }
 0x1e1   :  { %v724_v49 = vand.u32 4294901760, %v652_v48 }
 0x1e3   :  { %v725_v39 = vsub.f32 %v652_v48, %v724_v49 }
 0x1e5   :  { %v726_v51 = vand.u32 4294901760, %v725_v39 }
 0x1e7   :  { %v727_v52 = vsub.f32 %v725_v39, %v726_v51 }
 0x1e9   :  { %v728_v54 = vand.u32 4294901760, %v727_v52 }
 0x1eb   :  { %1535 = vmatmul.mubr.f32.vlgmr.msra.gmra.mrb[2].mxu1 %v728_v54 }
 0x1ec   :  { %1538 = vmatpush3.msra.mxu1 %v739_v53  ;;  %1539 = vmatprep.mubr.msk.f32.mxu1 %vm1755_vm0, %v1756_v35 }
 0x1ed   :  { %1542 = vmatprep.subr.mxu1 %v1756_v35 }
 0x1f3   :  { %1540 = vmatmul.mubr.f32.vlgmr.msra.gmra.mrb[2].mxu1 %v724_v49 }
 0x1f4   :  { %1543 = vmatpush3.msra.mxu1 %v736_v44  ;;  %1544 = vmatprep.mubr.msk.f32.mxu1 %vm1755_vm0, %v1756_v35 }
 0x1f5   :  { %1547 = vmatprep.subr.mxu1 %v1756_v35 }
 0x1fb   :  { %1545 = vmatmul.mubr.f32.vlgmr.msra.gmra.mrb[2].mxu1 %v725_v39 }
 0x1fc   :  { %1548 = vmatpush3.msra.mxu1 %v659_v38  ;;  %1549 = vmatprep.mubr.msk.f32.mxu1 %vm1755_vm0, %v1756_v35 }
 0x1fd   :  { %1552 = vmatprep.subr.mxu1 %v1756_v35 }
 0x203   :  { %1550 = vmatmul.mubr.f32.vlgmr.msra.gmra.mrb[2].mxu1 %v726_v51 }
 0x204   :  { %1553 = vmatpush3.msra.mxu1 %v737_v29  ;;  %1554 = vmatprep.mubr.msk.f32.mxu1 %vm1755_vm0, %v1756_v35 }
 0x205   :  { %1557 = vmatprep.subr.mxu1 %v1756_v35 }
 0x20b   :  { %1555 = vmatmul.mubr.f32.vlgmr.msra.gmra.mrb[2].mxu1 %v724_v49 }
 0x20c   :  { %1558 = vmatpush3.msra.mxu1 %v659_v38  ;;  %1559 = vmatprep.mubr.msk.f32.mxu1 %vm1755_vm0, %v1756_v35 }
 0x213   :  { %1560 = vmatmul.mubr.f32.vlgmr.msra.gmra.mrb[2].mxu1 %v724_v49 }
 0x2e6   :  { %v1100_v55 = vpop.f32.mrb[2].mxu1 }
 0x2e7   :  { %v1409_v56 = vmul.f32 -1.442695, %v1100_v55  ;;  %v1561_v57 = vpop.f32.mrb[3].mxu1  ;;  %v1262_v55 = vstv %s1415_s2 }
 0x2e9   :  { %1634 = vpow2.f32 %v1409_v56  ;;  %v1270_v56 = vstv %s1416_s3 }
 0x2f3   :  { %v1635_v58 = vpop.eup %1634 }
 0x2f4   :  { %v1107_v59 = vadd.f32 1.0, %v1635_v58 }
 0x2f6   :  { %1636 = vrcp.f32 %v1107_v59 }
 0x300   :  { %v1637_v61 = vpop.eup %1636 }
 0x301   :  { %v1113_v62 = vrot.slane %v1637_v61, %v1969_v60  ;;  %v1132_v8 = vrot.slane %v1637_v61, %v1131_v63 }
 0x303   :  { %1119 = vbcast.lane.b32.xlu1 %v1113_v62, 264  ;;  %1115 = vbcast.lane.b32.xlu0 %v1113_v62, 256 }
 0x307   :  { %1134 = vbcast.lane.b32.xlu1 %v1132_v8, 256  ;;  %1123 = vbcast.lane.b32.xlu0 %v1113_v62, 272 }
 0x30b   :  { %1138 = vbcast.lane.b32.xlu1 %v1132_v8, 264  ;;  %1127 = vbcast.lane.b32.xlu0 %v1113_v62, 280 }
 0x30f   :  { %1142 = vbcast.lane.b32.xlu1 %v1132_v8, 272 }
 0x313   :  { %1146 = vbcast.lane.b32.xlu1 %v1132_v8, 280 }
 0x375   :  { %v1120_v35 = vpop.permute.xlu1 %1119  ;;  %v1116_v9 = vpop.permute.xlu0 %1115 }
 0x376   :  { %v1974_v10 = vmul.f32 %v1120_v35, %v1859_v3  ;;  %v1977_v11 = vmul.f32 %v1116_v9, %v1853_v1 }
 0x378   :  { %v1156_v15 = vadd.f32 %v1974_v10, %v1977_v11 }
 0x379   :  { %v1135_v12 = vpop.permute.xlu1 %1134  ;;  %v1124_v13 = vpop.permute.xlu0 %1123 }
 0x37a   :  { %v1980_v14 = vmul.f32 %v1124_v13, %v1865_v5  ;;  %v1997_v22 = vmul.f32 %v1135_v12, %v1851_v0  ;;  %v1215_v13 = vstv %s1410_s16 }
 0x37c   :  { %v1157_v18 = vadd.f32 %v1156_v15, %v1980_v14  ;;  %v1177_v3 = vmax.f32 %v1977_v11, %v1980_v14 }
 0x37d   :  { %v1139_v16 = vpop.permute.xlu1 %1138  ;;  %v1128_v17 = vpop.permute.xlu0 %1127 }
 0x37e   :  { %v1986_v19 = vmul.f32 %v1128_v17, %v1871_v7  ;;  %v1991_v1 = vmul.f32 %v1139_v16, %v1857_v2  ;;  %v1213_v16 = vstv %s1195_s17 }
 0x380   :  { %v1158_v20 = vadd.f32 %v1157_v18, %v1986_v19  ;;  %v1178_v5 = vmax.f32 %v1974_v10, %v1986_v19  ;;  %v1165_v25 = vadd.f32 %v1991_v1, %v1997_v22  ;;  %v1234_v18 = vstv %s1412_s19 }
 0x381   :  { %v1143_v21 = vpop.permute.xlu1 %1142 }
 0x382   :  { %v1159_v23 = vrot.slane %v1158_v20, 4  ;;  %v1179_v24 = vmax.f32 %v1177_v3, %v1178_v5  ;;  %v2000_v7 = vmul.f32 %v1143_v21, %v1863_v4  ;;  %v1228_v3 = vadd.s32 4294967294, %v1915_v45 }
 0x384   :  { %v1160_v26 = vadd.f32 %v1159_v23, %v1158_v20  ;;  %v1180_v2 = vrot.slane %v1179_v24, 4  ;;  %v1166_v31 = vadd.f32 %v1165_v25, %v2000_v7  ;;  %v1186_v0 = vmax.f32 %v1997_v22, %v2000_v7 }
 0x385   :  { %v1147_v27 = vpop.permute.xlu1 %1146  ;;  %v1232_v20 = vstv %s1411_s20  ;;  %v1209_v23 = vadd.s32 4294967293, %v1915_v45  ;;  %vm1229_vm8 = vcmp.ge.s32.totalorder %v1228_v3, 0 }
 0x386   :  { %v1161_v28 = vrot.slane %v1160_v26, 2  ;;  %v1181_v30 = vmax.f32 %v1179_v24, %v1180_v2  ;;  %v2006_v32 = vmul.f32 %v1147_v27, %v1869_v6  ;;  %v1253_v27 = vstv %s1414_s21 }
 0x387   :  { %vm1210_vm9 = vcmp.ge.s32.totalorder %v1209_v23, 0 }
 0x388   :  { %v1162_v33 = vadd.f32 %v1161_v28, %v1160_v26  ;;  %v1182_v34 = vrot.slane %v1181_v30, 2  ;;  %v1167_v4 = vadd.f32 %v1166_v31, %v2006_v32  ;;  %v1187_v36 = vmax.f32 %v1991_v1, %v2006_v32 }
 0x389   :  { %v1247_v28 = vadd.s32 4294967295, %v1915_v45 }
 0x38a   :  { %v1168_v38 = vrot.slane %v1167_v4, 4  ;;  %v1188_v40 = vmax.f32 %v1186_v0, %v1187_v36  ;;  %v1163_v41 = vrot.slane %v1162_v33, 1  ;;  %v1183_v42 = vmax.f32 %v1181_v30, %v1182_v34 }
 0x38b   :  { %v1251_v30 = vstv %s1413_s22  ;;  %vm1248_vm10 = vcmp.ge.s32.totalorder %v1247_v28, 0 }
 0x38c   :  { %v1169_v43 = vadd.f32 %v1168_v38, %v1167_v4  ;;  %v1189_v37 = vrot.slane %v1188_v40, 4  ;;  %v1164_v46 = vadd.f32 %v1163_v41, %v1162_v33  ;;  %v1184_v48 = vrot.slane %v1183_v42, 1 }
 0x38d   :  { %v1288_v41 = vstv %s2024_s24 }
 0x38e   :  { %v1170_v6 = vrot.slane %v1169_v43, 2  ;;  %v1190_v44 = vmax.f32 %v1188_v40, %v1189_v37  ;;  %v1175_v51 = vmul.f32 0.03125, %v1164_v46  ;;  %v1185_v52 = vmax.f32 %v1183_v42, %v1184_v48 }
 0x38f   :  { %v1290_v40 = vstv %s2022_s23 }
 0x390   :  { %v1171_v29 = vadd.f32 %v1170_v6, %v1169_v43  ;;  %v1191_v49 = vrot.slane %v1190_v44, 2  ;;  %v1263_v59 = vmul.f32 %v1262_v55, %v1175_v51  ;;  %v1271_v61 = vmul.f32 %v1270_v56, %v1185_v52 }
 0x392   :  { %v1172_v39 = vrot.slane %v1171_v29, 1  ;;  %v1192_v50 = vmax.f32 %v1190_v44, %v1191_v49  ;;  %v1284_v44 = vadd.s32 1, %v1915_v45 }
 0x394   :  { %v1173_v53 = vadd.f32 %v1172_v39, %v1171_v29  ;;  %v1193_v54 = vrot.slane %v1192_v50, 1  ;;  %v1303_v39 = vadd.s32 2, %v1915_v45  ;;  %vm1286_vm11 = vcmp.lt.s32.totalorder %v1284_v44, 128 }
 0x396   :  { %v1176_v57 = vmul.f32 0.03125, %v1173_v53  ;;  %v1194_v58 = vmax.f32 %v1192_v50, %v1193_v54  ;;  %vm1305_vm12 = vcmp.lt.s32.totalorder %v1303_v39, 128 }
 0x398   :  { %v1205_v62 = vsel %vm158_vm4, %v1194_v58, %v1185_v52  ;;  %v1199_v63 = vsel %vm158_vm4, %v1176_v57, %v1175_v51  ;;  %v1264_v8 = vmul.f32 %v1262_v55, %v1176_v57  ;;  %v1272_v35 = vmul.f32 %v1270_v56, %v1194_v58 }
 0x399   :  { %1207 = vrot.lane.b32.xlu1 %v1205_v62, %s1757_s11  ;;  %1201 = vrot.lane.b32.xlu0 %v1199_v63, %s1757_s11  ;;  %v1309_v51 = vstv %s2028_s0  ;;  %v1307_v52 = vstv %s2030_s18 }
 0x39a   :  { %v2016_v9 = vsel %vm158_vm4, %v1264_v8, %v1263_v59  ;;  %v2019_v12 = vsel %vm158_vm4, %v1272_v35, %v1271_v61  ;;  %v1328_v61 = vstv %s2034_s25 }
 0x39d   :  { %1226 = vrot.lane.b32.xlu1 %v1205_v62, %s1758_s12  ;;  %1224 = vrot.lane.b32.xlu0 %v1199_v63, %s1758_s12 }
 0x3a1   :  { %1245 = vrot.lane.b32.xlu1 %v1205_v62, %s1759_s1  ;;  %1243 = vrot.lane.b32.xlu0 %v1199_v63, %s1759_s1 }
 0x3a5   :  { %1282 = vrot.lane.b32.xlu1 %v1205_v62, %s1760_s13  ;;  %1280 = vrot.lane.b32.xlu0 %v1199_v63, %s1760_s13 }
 0x3a9   :  { %1301 = vrot.lane.b32.xlu1 %v1205_v62, %s1761_s14  ;;  %1299 = vrot.lane.b32.xlu0 %v1199_v63, %s1761_s14 }
 0x3ad   :  { %1320 = vrot.lane.b32.xlu1 %v1205_v62, %s1762_s15  ;;  %1318 = vrot.lane.b32.xlu0 %v1199_v63, %s1762_s15  ;;  %v1322_v62 = vadd.s32 3, %v1915_v45  ;;  %v1326_v63 = vstv %s2036_s26 }
 0x3af   :  { %vm1324_vm13 = vcmp.lt.s32.totalorder %v1322_v62, 128 }
 0x40b   :  { %v1208_v15 = vpop.permute.xlu1 %1207  ;;  %v1202_v17 = vpop.permute.xlu0 %1201 }
 0x40c   :  { %v1216_v5 = vmul.f32 %v1215_v13, %v1208_v15  ;;  %v1214_v21 = vmul.f32 %v1213_v16, %v1202_v17 }
 0x40e   :  { %v1217_v31 = vadd.f32 %v1216_v5, %v1214_v21 }
 0x40f   :  { %v1227_v24 = vpop.permute.xlu1 %1226  ;;  %v1225_v25 = vpop.permute.xlu0 %1224 }
 0x410   :  { %v1235_v26 = vmul.f32 %v1234_v18, %v1227_v24  ;;  %v1233_v2 = vmul.f32 %v1232_v20, %v1225_v25  ;;  %v1220_v42 = vsel %vm1210_vm9, %v1217_v31, 0.0  ;;  %v1763_v25 = vmov 1966171168  }
 0x411   :  { %v1343_v45 = vunpack.c.l.s4 %v1763_v25 }
 0x412   :  { %v1236_v0 = vadd.f32 %v1235_v26, %v1233_v2 }
 0x413   :  { %v1246_v33 = vpop.permute.xlu1 %1245  ;;  %v1244_v34 = vpop.permute.xlu0 %1243  ;;  %v1344_v26 = vunpack.c.0.s8 %v1343_v45 }
 0x414   :  { %v1239_v4 = vsel %vm1229_vm8, %v1236_v0, 0.0  ;;  %v1254_v36 = vmul.f32 %v1253_v27, %v1246_v33  ;;  %v1252_v38 = vmul.f32 %v1251_v30, %v1244_v34 }
 0x415   :  { %v1240_v37 = vadd.f32 %v1239_v4, %v1220_v42  ;;  %v1347_v2 = vsub.s32 %v1344_v26, %v1918_v47 }
 0x416   :  { %v1255_v43 = vadd.f32 %v1254_v36, %v1252_v38 }
 0x417   :  { %v1283_v6 = vpop.permute.xlu1 %1282  ;;  %v1281_v46 = vpop.permute.xlu0 %1280 }
 0x418   :  { %v1258_v48 = vsel %vm1248_vm10, %v1255_v43, 0.0  ;;  %v1291_v29 = vmul.f32 %v1290_v40, %v1283_v6  ;;  %v1289_v49 = vmul.f32 %v1288_v41, %v1281_v46 }
 0x419   :  { %v1259_v50 = vadd.f32 %v1258_v48, %v1240_v37 }
 0x41a   :  { %v1292_v53 = vadd.f32 %v1291_v29, %v1289_v49 }
 0x41b   :  { %v1269_v54 = vadd.f32 %v2016_v9, %v1259_v50  ;;  %v1302_v55 = vpop.permute.xlu1 %1301  ;;  %v1300_v56 = vpop.permute.xlu0 %1299 }
 0x41c   :  { %v1310_v57 = vmul.f32 %v1309_v51, %v1302_v55  ;;  %v1308_v58 = vmul.f32 %v1307_v52, %v1300_v56  ;;  %v1295_v8 = vsel %vm1286_vm11, %v1292_v53, 0.0 }
 0x41d   :  { %v1277_v59 = vadd.f32 %v2019_v12, %v1269_v54 }
 0x41e   :  { %v1311_v35 = vadd.f32 %v1310_v57, %v1308_v58 }
 0x41f   :  { %v1296_v13 = vadd.f32 %v1295_v8, %v1277_v59  ;;  %v1321_v15 = vpop.permute.xlu1 %1320  ;;  %v1319_v16 = vpop.permute.xlu0 %1318 }
 0x420   :  { %v1314_v17 = vsel %vm1305_vm12, %v1311_v35, 0.0  ;;  %v1329_v18 = vmul.f32 %v1328_v61, %v1321_v15  ;;  %v1327_v9 = vmul.f32 %v1326_v63, %v1319_v16 }
 0x421   :  { %v1315_v20 = vadd.f32 %v1314_v17, %v1296_v13 }
 0x422   :  { %v1330_v3 = vadd.f32 %v1329_v18, %v1327_v9 }
 0x424   :  { %v1333_v5 = vsel %vm1324_vm13, %v1330_v3, 0.0 }
 0x425   :  { %v1334_v21 = vadd.f32 %v1333_v5, %v1315_v20 }
 0x427   :  { %v1423_v23 = vmul.f32 -1.442695, %v1334_v21 }
 0x429   :  { %1638 = vpow2.f32 %v1423_v23 }
 0x433   :  { %v1639_v12 = vpop.eup %1638 }
 0x434   :  { %v1338_v24 = vadd.f32 1.0, %v1639_v12 }
 0x436   :  { %1640 = vrcp.f32 %v1338_v24 }
 0x440   :  { %v1641_v27 = vpop.eup %1640 }
 0x441   :  { %v1348_v28 = vrot.slane %v1641_v27, %v1347_v2 }
 0x443   :  { %v1349_v30 = vcombine.high %v1348_v28, %v1348_v28  ;;  %v1356_v31 = vrot.slane %v1348_v28, %v1347_v2 }
 0x445   :  { %v1363_v0 = vrot.slane %v1349_v30, %v1347_v2  ;;  %v1367_v33 = vrot.slane %v1356_v31, %v1969_v60 }
 0x447   :  { %v1371_v34 = vrot.slane %v1363_v0, %v1969_v60  ;;  %v1374_v4 = vmul.f32 %v1367_v33, %v1977_v11  ;;  %v1375_v36 = vmul.f32 %v1367_v33, %v1974_v10  ;;  %v1376_v38 = vmul.f32 %v1367_v33, %v1980_v14 }
 0x448   :  { %v1377_v40 = vmul.f32 %v1367_v33, %v1986_v19 }
 0x449   :  { %v1378_v47 = vmul.f32 %v1371_v34, %v1997_v22  ;;  %v1379_v41 = vmul.f32 %v1371_v34, %v1991_v1  ;;  %v1380_v42 = vmul.f32 %v1371_v34, %v2000_v7  ;;  %v1381_v43 = vmul.f32 %v1371_v34, %v2006_v32  ;;  %1382 = vst [vmem:[#allocation10] sm:$0xff] %v1374_v4 }
 0x44a   :  { %1383 = vst [vmem:[#allocation10 + $0x8] sm:$0xff] %v1375_v36  ;;  %1384 = vst [vmem:[#allocation10 + $0x10] sm:$0xff] %v1376_v38 }
 0x44b   :  { %1385 = vst [vmem:[#allocation10 + $0x18] sm:$0xff] %v1377_v40  ;;  %1386 = vst [vmem:[#allocation10 + $0x20] sm:$0xff] %v1378_v47 }
 0x44c   :  { %1387 = vst [vmem:[#allocation10 + $0x28] sm:$0xff] %v1379_v41  ;;  %1388 = vst [vmem:[#allocation10 + $0x30] sm:$0xff] %v1380_v42 }
 0x44d   :  { %1389 = vst [vmem:[#allocation10 + $0x38] sm:$0xff] %v1381_v43 }
 0x44e   :  { %1729 = shalt.err (!%p1726_p3)
}
 0x44f   :  { %s1730_s8 = scalar_lea.hbm %s2077_s4, 1024 }
 0x450   :  { %p1731_p4 = scmp.ne.s32.totalorder %s2077_s4, %s1730_s8  ;;  %p1734_p5 = scmp.lt.u32.totalorder %s1730_s8, %s2077_s4 }
 0x452   :  { %p1736_p6 = pnand %p1734_p5, %p1731_p4 }
 0x454   :  { %1739 = shalt.err (!%p1736_p6)
}
 0x455   :  { %1401 = dma.vmem_to_hbm [thread:$0]  %s1396_s30, 1024, %s2077_s4, [#allocation4], %s1750_s27, %s1750_s27, %s1751_s28  }
 0x456   :  { %1746 = dma.done.wait [#allocation4], 1024  }
 0x457   :  { %1747 = vsyncadd [#allocation4], 4294966272 }
 0x458   :  { %1405 = vsyncpa [#allocation3], 1 }
 0x459   :  { %1406 = vsyncpa [#allocation7], 1 }
 0x45a   :  { %1407 = vsyncpa [#allocation4], 1 }
 0x45b   :  { %1408 = vsyncpa [#allocation5], 1 }

</bundles_post_ra>
